<compile_context>
chip_gen: v7x
topology: tpu7x:2x2x1
jax: 0.10.0
libtpu: 0.0.40
codegen_flags: <defaults>
</compile_context>

<pallas_src>
import functools

import jax
import jax.numpy as jnp
from jax.experimental import pallas as pl
from jax.experimental.pallas import tpu as pltpu


def _round_up(v: int, m: int) -> int:
    return (v + m - 1) // m * m


def _largest_divisor_tile(n_pad: int, target: int) -> int:
    """Largest multiple of 128 that divides n_pad and is <= max(target, 128)."""
    t = max(min(target, n_pad), 128)
    t -= t % 128
    while n_pad % t:
        t -= 128
    return t


# --------------------------------------------------------------------------
# Kernel 1: support = x @ W   (computed once, large row blocks)
# --------------------------------------------------------------------------
def _support_kernel(x_ref, w_ref, o_ref):
    # [tile_s, C_in] @ [C_in, C_out_p] -> [tile_s, C_out_p], f32 accumulate.
    o_ref[...] = jnp.dot(
        x_ref[...], w_ref[...], preferred_element_type=jnp.float32
    ).astype(o_ref.dtype)


# --------------------------------------------------------------------------
# Kernel 2a: out = adj @ support + b, support fully VMEM-resident.
# adj is streamed tile-by-tile (row tiles x K tiles), f32 accumulator.
# --------------------------------------------------------------------------
def _propagate_resident_kernel(adj_ref, s_ref, b_ref, o_ref, acc_ref,
                               *, tile_k, compute_dtype):
    k = pl.program_id(1)

    @pl.when(k == 0)
    def _init():
        acc_ref[...] = jnp.zeros_like(acc_ref)

    # In-kernel cast of the adj tile (no wrapper-level N^2 cast pre-pass).
    a = adj_ref[...].astype(compute_dtype)
    # Slice the resident support slab along the contraction axis.
    start = pl.multiple_of(k * tile_k, 128)
    s = s_ref[pl.ds(start, tile_k), :]
    acc_ref[...] += jnp.dot(a, s, preferred_element_type=jnp.float32)

    @pl.when(k == pl.num_programs(1) - 1)
    def _finalize():
        # Bias add in f32, then cast once to the output dtype.
        o_ref[...] = (acc_ref[...] + b_ref[...]).astype(o_ref.dtype)


# --------------------------------------------------------------------------
# Kernel 2b: fallback when support is too large to keep resident — the support
# K-slab is streamed alongside the adj tile.
# --------------------------------------------------------------------------
def _propagate_stream_kernel(adj_ref, s_ref, b_ref, o_ref, acc_ref,
                             *, compute_dtype):
    k = pl.program_id(1)

    @pl.when(k == 0)
    def _init():
        acc_ref[...] = jnp.zeros_like(acc_ref)

    a = adj_ref[...].astype(compute_dtype)
    acc_ref[...] += jnp.dot(a, s_ref[...], preferred_element_type=jnp.float32)

    @pl.when(k == pl.num_programs(1) - 1)
    def _finalize():
        o_ref[...] = (acc_ref[...] + b_ref[...]).astype(o_ref.dtype)


# --------------------------------------------------------------------------
# Wrapper
# --------------------------------------------------------------------------
def evolvegcn_forward(x, adj, weight, bias, *,
                      compute_dtype=None,
                      target_tile_n=512,
                      target_tile_k=2048,
                      target_tile_rows=2048,
                      vmem_budget_bytes=40 << 20):
    """Pallas implementation of EvolveGCNLayer.forward.

    x:      [N, C_in]
    adj:    [N, N]
    weight: [C_in, C_out]
    bias:   [C_out]
    compute_dtype: dtype fed to the MXU for adj/support (jnp.bfloat16 is the
        fast path; adj is cast in-kernel, so there is no extra HBM pre-pass).
        Accumulation is always f32.  Default: adj.dtype (matches PyTorch).
    returns [N, C_out]
    """
    n, c_in = x.shape
    c_out = weight.shape[1]
    assert adj.shape == (n, n)
    assert weight.shape == (c_in, c_out)
    assert bias.shape == (c_out,)

    out_dtype = x.dtype
    if compute_dtype is None:
        compute_dtype = adj.dtype

    adj_bytes = jnp.dtype(adj.dtype).itemsize
    x_bytes = jnp.dtype(x.dtype).itemsize
    cbytes = jnp.dtype(compute_dtype).itemsize
    obytes = jnp.dtype(out_dtype).itemsize

    # ---- lane-dense output channels: pad C_out up to a multiple of 128 ----
    c_out_p = _round_up(c_out, 128)
    w_pad = jnp.pad(weight.astype(jnp.float32), ((0, 0), (0, c_out_p - c_out)))
    b_pad = jnp.pad(bias.astype(jnp.float32),
                    (0, c_out_p - c_out)).reshape(1, c_out_p)

    # ---- minimal node-dim padding (only when N is not already 128-aligned) --
    n_pad = _round_up(n, 128)
    if n_pad != n:
        x = jnp.pad(x, ((0, n_pad - n), (0, 0)))
        adj = jnp.pad(adj, ((0, n_pad - n), (0, n_pad - n)))

    # ---------------- tile selection (VMEM-budgeted, v7x-safe) --------------
    # Row tile: prefer >= 2 row tiles so both v7x TensorCores get work.
    tile_n = _largest_divisor_tile(n_pad, min(target_tile_n, max(n_pad // 2, 128)))
    tile_k = _largest_divisor_tile(n_pad, target_tile_k)

    support_bytes = n_pad * c_out_p * cbytes
    # Budget 2x for the resident support (conservative: buffer pair).
    support_resident = 2 * support_bytes <= vmem_budget_bytes // 2

    def prop_working_set(tn, tk):
        ws = 2 * tn * tk * adj_bytes                       # adj double-buffer
        ws += (2 * support_bytes) if support_resident \
            else (2 * tk * c_out_p * cbytes)               # support buffers
        ws += tn * c_out_p * 4                             # f32 accumulator
        ws += 2 * tn * c_out_p * obytes                    # output double-buffer
        ws += 2 * c_out_p * 4                              # bias
        return ws

    while prop_working_set(tile_n, tile_k) > vmem_budget_bytes and tile_k > 128:
        tile_k = _largest_divisor_tile(n_pad, tile_k - 128)
    while prop_working_set(tile_n, tile_k) > vmem_budget_bytes and tile_n > 128:
        tile_n = _largest_divisor_tile(n_pad, tile_n - 128)

    # Kernel-1 row tile: decoupled from tile_n and much larger.
    tile_s = _largest_divisor_tile(n_pad, target_tile_rows)
    while (2 * tile_s * c_in * x_bytes + 2 * tile_s * c_out_p * cbytes
           + 2 * c_in * c_out_p * 4) > (32 << 20) and tile_s > 128:
        tile_s = _largest_divisor_tile(n_pad, tile_s - 128)

    # ---- kernel 1: support = x @ W (once) ----
    sup_ws = (2 * tile_s * c_in * x_bytes + 2 * tile_s * c_out_p * cbytes
              + 2 * c_in * c_out_p * 4)
    sup_cost = pl.CostEstimate(
        flops=2 * n_pad * c_in * c_out_p,
        transcendentals=0,
        bytes_accessed=(n_pad * c_in * x_bytes
                        + c_in * c_out_p * 4
                        + n_pad * c_out_p * cbytes),
    )
    support = pl.pallas_call(
        _support_kernel,
        out_shape=jax.ShapeDtypeStruct((n_pad, c_out_p), compute_dtype),
        grid_spec=pltpu.PrefetchScalarGridSpec(
            num_scalar_prefetch=0,
            grid=(n_pad // tile_s,),
            in_specs=[
                pl.BlockSpec((tile_s, c_in), lambda i: (i, 0)),
                pl.BlockSpec((c_in, c_out_p), lambda i: (0, 0)),
            ],
            out_specs=pl.BlockSpec((tile_s, c_out_p), lambda i: (i, 0)),
        ),
        compiler_params=pltpu.CompilerParams(
            dimension_semantics=("parallel",),
            vmem_limit_bytes=int(min(max(sup_ws + (8 << 20), 32 << 20), 56 << 20)),
        ),
        cost_estimate=sup_cost,
    )(x, w_pad)

    # ---- kernel 2: out = adj @ support + b ----
    if support_resident:
        # Constant index_map -> the whole support slab is fetched once and
        # stays in VMEM across every grid step.
        s_spec = pl.BlockSpec((n_pad, c_out_p), lambda i, k: (0, 0))
        kernel2 = functools.partial(_propagate_resident_kernel,
                                    tile_k=tile_k, compute_dtype=compute_dtype)
        support_traffic = support_bytes
    else:
        s_spec = pl.BlockSpec((tile_k, c_out_p), lambda i, k: (k, 0))
        kernel2 = functools.partial(_propagate_stream_kernel,
                                    compute_dtype=compute_dtype)
        support_traffic = (n_pad // tile_n) * support_bytes

    prop_cost = pl.CostEstimate(
        flops=2 * n_pad * n_pad * c_out_p,
        transcendentals=0,
        bytes_accessed=(n_pad * n_pad * adj_bytes      # adj stream (dominant)
                        + support_traffic              # matches actual BlockSpec
                        + n_pad * c_out_p * obytes     # output
                        + c_out_p * 4),                # bias
    )
    vmem_limit = int(min(max(prop_working_set(tile_n, tile_k) + (8 << 20),
                             32 << 20), 56 << 20))

    out_p = pl.pallas_call(
        kernel2,
        out_shape=jax.ShapeDtypeStruct((n_pad, c_out_p), out_dtype),
        grid_spec=pltpu.PrefetchScalarGridSpec(
            num_scalar_prefetch=0,
            grid=(n_pad // tile_n, n_pad // tile_k),
            in_specs=[
                # adj row/col tile: the only large per-step DMA.
                # (If profiling shows exposed DMA, bump to
                #  pipeline_mode=pl.Buffered(3) after re-checking VMEM budget.)
                pl.BlockSpec((tile_n, tile_k), lambda i, k: (i, k)),
                s_spec,
                # bias: tiny, resident.
                pl.BlockSpec((1, c_out_p), lambda i, k: (0, 0)),
            ],
            out_specs=pl.BlockSpec((tile_n, c_out_p), lambda i, k: (i, 0)),
            scratch_shapes=[pltpu.VMEM((tile_n, c_out_p), jnp.float32)],
        ),
        compiler_params=pltpu.CompilerParams(
            dimension_semantics=("parallel", "arbitrary"),
            vmem_limit_bytes=vmem_limit,
        ),
        cost_estimate=prop_cost,
    )(adj, support, b_pad)

    return out_p[:n, :c_out]


def xavier_uniform(key, shape, dtype=jnp.float32):
    """Matches torch.nn.init.xavier_uniform_ (gain=1) for a 2-D tensor."""
    fan_in, fan_out = shape
    limit = (6.0 / (fan_in + fan_out)) ** 0.5
    return jax.random.uniform(key, shape, dtype, minval=-limit, maxval=limit)


if __name__ == "__main__":
    key = jax.random.PRNGKey(0)
    k_x, k_adj, k_w = jax.random.split(key, 3)

    num_nodes = 256
    in_channels = 64
    out_channels = 32

    # Deterministic parameter init (mirrors reset_parameters()).
    weight = xavier_uniform(k_w, (in_channels, out_channels))
    bias = jnp.zeros((out_channels,), jnp.float32)

    # Example inputs.
    x = jax.random.normal(k_x, (num_nodes, in_channels), jnp.float32)
    adj_raw = jax.random.uniform(k_adj, (num_nodes, num_nodes), jnp.float32)
    adj = (adj_raw + adj_raw.T) * 0.5  # symmetric "adjacency" matrix

    # --- f32 path: exact forward semantics of the PyTorch module ---
    out = evolvegcn_forward(x, adj, weight, bias)
    out = jax.block_until_ready(out)
    ref = adj @ (x @ weight) + bias
    assert out.shape == (num_nodes, out_channels)
    assert jnp.allclose(out, ref, rtol=1e-4, atol=1e-3), "f32 mismatch vs reference"

    # --- bf16 MXU-feed fast path (f32 accumulate; adj cast in-kernel) ---
    out_bf16 = evolvegcn_forward(x, adj, weight, bias,
                                 compute_dtype=jnp.bfloat16)
    out_bf16 = jax.block_until_ready(out_bf16)
    # Reference that applies the same bf16 rounding to the MXU operands.
    sup_bf = (x @ weight).astype(jnp.bfloat16).astype(jnp.float32)
    adj_bf = adj.astype(jnp.bfloat16).astype(jnp.float32)
    ref_bf = adj_bf @ sup_bf + bias
    assert out_bf16.shape == (num_nodes, out_channels)
    assert jnp.allclose(out_bf16, ref_bf, rtol=2e-2, atol=2e-2), "bf16 mismatch"

    print("KERNEL_OK")
</pallas_src>

<mosaic_0001>
module attributes {stable_mosaic.version = 11 : i64} {
  func.func @_support_kernel(%arg0: i32, %arg1: memref<256x64xf32, #tpu.memory_space<vmem>>, %arg2: memref<64x128xf32, #tpu.memory_space<vmem>>, %arg3: memref<256x128xf32, #tpu.memory_space<vmem>>) attributes {dimension_semantics = [#tpu.dimension_semantics<parallel>], iteration_bounds = array<i64: 1>, scalar_prefetch = 0 : i64, scratch_operands = 0 : i64, tpu.core_type = #tpu.core_type<tc>, window_params = [{transform_indices = @transform_0, window_bounds = array<i64: 256, 64>}, {pipeline_mode = #tpu.pipeline_mode<synchronous>, transform_indices = @transform_1, window_bounds = array<i64: 64, 128>}, {transform_indices = @transform_2, window_bounds = array<i64: 256, 128>}]} {
    %c0 = arith.constant 0 : index
    %c0_0 = arith.constant 0 : index
    %0 = vector.load %arg1[%c0, %c0_0] : memref<256x64xf32, #tpu.memory_space<vmem>>, vector<256x64xf32>
    %c0_1 = arith.constant 0 : index
    %c0_2 = arith.constant 0 : index
    %1 = vector.load %arg2[%c0_1, %c0_2] : memref<64x128xf32, #tpu.memory_space<vmem>>, vector<64x128xf32>
    %cst = arith.constant dense<0.000000e+00> : vector<256x128xf32>
    %2 = tpu.matmul %0, %1, %cst {dimension_numbers = #tpu.dot_dimension_numbers<[1], [0], [0], [1], [0, 0, 1, 1], [], []>} : vector<256x64xf32>, vector<64x128xf32>, vector<256x128xf32> -> vector<256x128xf32>
    %c0_3 = arith.constant 0 : index
    %c0_4 = arith.constant 0 : index
    %3 = vector.load %arg3[%c0_3, %c0_4] : memref<256x128xf32, #tpu.memory_space<vmem>>, vector<256x128xf32>
    tpu.vector_store %arg3[%c0_3, %c0_4], %2 {strides = array<i32>} : memref<256x128xf32, #tpu.memory_space<vmem>>, vector<256x128xf32>,
    return
  }
  func.func @transform_0(%arg0: i32) -> (i32, i32) {
    %c0_i32 = arith.constant 0 : i32
    %c0_i32_0 = arith.constant 0 : i32
    return %arg0, %c0_i32 : i32, i32
  }
  func.func @transform_1(%arg0: i32) -> (i32, i32) {
    %c0_i32 = arith.constant 0 : i32
    %c0_i32_0 = arith.constant 0 : i32
    %c0_i32_1 = arith.constant 0 : i32
    return %c0_i32, %c0_i32_0 : i32, i32
  }
  func.func @transform_2(%arg0: i32) -> (i32, i32) {
    %c0_i32 = arith.constant 0 : i32
    %c0_i32_0 = arith.constant 0 : i32
    return %arg0, %c0_i32 : i32, i32
  }
}

</mosaic_0001>

<bundles_post_ra>
// kernel: tpu_custom_call.1
= control target key start
LH: loop header
LB: loop body
LE: loop exit
PB: predicated region body
PF: predicated region fallthrough
CT: control target
= control target key end

     0   :  { %vm52_vm0 = vcmask 523264   ;;  %s791_s0 = inlined_call_operand.vmem [shape: f32[256,64], index: 0, kind: input, shape index: {}]   ;;  %s792_s1 = inlined_call_operand.vmem [shape: f32[64,128], index: 1, kind: input, shape index: {}]   ;;  %s793_s2 = inlined_call_operand.hbm [shape: f32[256,128], index: 2, kind: output, shape index: {}]  }
   0x1   :  { %v44_v0 = vld [vmem:[%s792_s1] sm:$0xff]  ;;  %v45_v1 = vld [vmem:[%s792_s1 + $0x8] sm:$0xff]  ;;  %v46_v2 = vld [vmem:[%s792_s1 + $0x10] sm:$0xff] }
   0x2   :  { %v558_v3 = vpack.c.bf16 %v45_v1, %v44_v0  ;;  %v47_v4 = vld [vmem:[%s792_s1 + $0x18] sm:$0xff]  ;;  %v48_v6 = vld [vmem:[%s792_s1 + $0x20] sm:$0xff]  ;;  %v49_v7 = vld [vmem:[%s792_s1 + $0x28] sm:$0xff] }
   0x3   :  { %v562_v5 = vpack.c.bf16 %v47_v4, %v46_v2  ;;  %v12_v8 = vld [vmem:[%s791_s0] sm:$0xff]  ;;  %v566_v10 = vpack.c.bf16 %v49_v7, %v48_v6  ;;  %v50_v11 = vld [vmem:[%s792_s1 + $0x30] sm:$0xff]  ;;  %v51_v12 = vld [vmem:[%s792_s1 + $0x38] sm:$0xff] }
   0x4   :  { %559 = vmatprep.subr.bf16.mxu0 %v558_v3  ;;  %574 = vmatprep.subr.bf16.mxu1 %v558_v3  ;;  %v28_v9 = vld [vmem:[%s791_s0 + $0x80] sm:$0xff]  ;;  %v570_v13 = vpack.c.bf16 %v51_v12, %v50_v11 }
   0x5   :  { %561 = vmatpush3.bf16.msra.mxu0 %v558_v3  ;;  %578 = vmatpush3.bf16.msra.mxu1 %v558_v3 }
   0x6   :  { %563 = vmatprep.subr.bf16.mxu0 %v562_v5  ;;  %575 = vmatprep.subr.bf16.mxu1 %v562_v5 }
   0x7   :  { %510 = vmatprep.mubr.msk.f32.mxu0 %vm52_vm0, %v12_v8  ;;  %534 = vmatprep.mubr.msk.f32.mxu1 %vm52_vm0, %v28_v9 }
   0x9   :  { %565 = vmatpush3.bf16.msra.mxu0 %v562_v5  ;;  %579 = vmatpush3.bf16.msra.mxu1 %v562_v5 }
   0xa   :  { %567 = vmatprep.subr.bf16.mxu0 %v566_v10  ;;  %576 = vmatprep.subr.bf16.mxu1 %v566_v10 }
   0xd   :  { %569 = vmatpush3.bf16.msra.mxu0 %v566_v10  ;;  %580 = vmatpush3.bf16.msra.mxu1 %v566_v10 }
   0xe   :  { %571 = vmatprep.subr.bf16.mxu0 %v570_v13  ;;  %577 = vmatprep.subr.bf16.mxu1 %v570_v13 }
   0xf   :  { %7 = vsyncpa [#allocation3], 0  ;;  %v13_v14 = vld [vmem:[%s791_s0 + $0x8] sm:$0xff]  ;;  %v14_v16 = vld [vmem:[%s791_s0 + $0x10] sm:$0xff] }
  0x10   :  { %v29_v15 = vld [vmem:[%s791_s0 + $0x88] sm:$0xff]  ;;  %v30_v17 = vld [vmem:[%s791_s0 + $0x90] sm:$0xff]  ;;  %v15_v18 = vld [vmem:[%s791_s0 + $0x18] sm:$0xff] }
  0x11   :  { %573 = vmatpush3.bf16.msra.mxu0 %v570_v13  ;;  %581 = vmatpush3.bf16.msra.mxu1 %v570_v13  ;;  %v31_v19 = vld [vmem:[%s791_s0 + $0x98] sm:$0xff]  ;;  %v16_v20 = vld [vmem:[%s791_s0 + $0x20] sm:$0xff]  ;;  %v17_v22 = vld [vmem:[%s791_s0 + $0x28] sm:$0xff] }
  0x12   :  { %v32_v21 = vld [vmem:[%s791_s0 + $0xa0] sm:$0xff]  ;;  %v33_v23 = vld [vmem:[%s791_s0 + $0xa8] sm:$0xff]  ;;  %v18_v24 = vld [vmem:[%s791_s0 + $0x30] sm:$0xff] }
  0x13   :  { %v34_v25 = vld [vmem:[%s791_s0 + $0xb0] sm:$0xff]  ;;  %v19_v26 = vld [vmem:[%s791_s0 + $0x38] sm:$0xff]  ;;  %v20_v28 = vld [vmem:[%s791_s0 + $0x40] sm:$0xff] }
  0x14   :  { %511 = vmatmul.mubr.msk.f32.vlgmr.msra.gmra.mrb[0].mxu0 %vm52_vm0, %v13_v14  ;;  %535 = vmatmul.mubr.msk.f32.vlgmr.msra.gmra.mrb[0].mxu1 %vm52_vm0, %v29_v15  ;;  %v35_v27 = vld [vmem:[%s791_s0 + $0xb8] sm:$0xff]  ;;  %v36_v29 = vld [vmem:[%s791_s0 + $0xc0] sm:$0xff]  ;;  %v21_v30 = vld [vmem:[%s791_s0 + $0x48] sm:$0xff] }
  0x15   :  { %513 = vmatprep.mubr.msk.f32.mxu0 %vm52_vm0, %v14_v16  ;;  %537 = vmatprep.mubr.msk.f32.mxu1 %vm52_vm0, %v30_v17  ;;  %v37_v31 = vld [vmem:[%s791_s0 + $0xc8] sm:$0xff]  ;;  %v22_v32 = vld [vmem:[%s791_s0 + $0x50] sm:$0xff]  ;;  %v23_v34 = vld [vmem:[%s791_s0 + $0x58] sm:$0xff] }
  0x16   :  { %v38_v33 = vld [vmem:[%s791_s0 + $0xd0] sm:$0xff]  ;;  %v39_v35 = vld [vmem:[%s791_s0 + $0xd8] sm:$0xff]  ;;  %v24_v36 = vld [vmem:[%s791_s0 + $0x60] sm:$0xff] }
  0x17   :  { %v40_v37 = vld [vmem:[%s791_s0 + $0xe0] sm:$0xff]  ;;  %v25_v38 = vld [vmem:[%s791_s0 + $0x68] sm:$0xff]  ;;  %v26_v40 = vld [vmem:[%s791_s0 + $0x70] sm:$0xff] }
  0x18   :  { %514 = vmatmul.mubr.msk.f32.gmra.mrb[2].mxu0 %vm52_vm0, %v15_v18  ;;  %538 = vmatmul.mubr.msk.f32.gmra.mrb[2].mxu1 %vm52_vm0, %v31_v19  ;;  %v41_v39 = vld [vmem:[%s791_s0 + $0xe8] sm:$0xff]  ;;  %v42_v41 = vld [vmem:[%s791_s0 + $0xf0] sm:$0xff]  ;;  %v27_v42 = vld [vmem:[%s791_s0 + $0x78] sm:$0xff] }
  0x19   :  { %516 = vmatprep.mubr.msk.f32.mxu0 %vm52_vm0, %v16_v20  ;;  %540 = vmatprep.mubr.msk.f32.mxu1 %vm52_vm0, %v32_v21  ;;  %v43_v43 = vld [vmem:[%s791_s0 + $0xf8] sm:$0xff]  ;;  %s609_s0 = smov [#allocation2]  }
  0x1a   :  { %s411_s1 = sshll.u32 %s609_s0, 4  ;;  %s412_s1 = int_to_ptr.vmem [resolvable:$true] %s411_s1 }
  0x1b   :  { %s585_s3 = scalar_lea.vmem %s412_s1, 4096  ;;  %p590_p1 = scmp.lt.s32.totalorder %s412_s1, %s412_s1 }
  0x1c   :  { %517 = vmatmul.mubr.msk.f32.gmra.mrb[4].mxu0 %vm52_vm0, %v17_v22  ;;  %541 = vmatmul.mubr.msk.f32.gmra.mrb[4].mxu1 %vm52_vm0, %v33_v23  ;;  %p586_p0 = scmp.ne.s32.totalorder %s412_s1, %s585_s3  ;;  %p591_p2 = scmp.lt.s32.totalorder %s585_s3, %s585_s3 }
  0x1d   :  { %519 = vmatprep.mubr.msk.f32.mxu0 %vm52_vm0, %v18_v24  ;;  %543 = vmatprep.mubr.msk.f32.mxu1 %vm52_vm0, %v34_v25 }
  0x1e   :  { %p592_p3 = por %p591_p2, %p590_p1 }
  0x20   :  { %520 = vmatmul.mubr.msk.f32.gmra.mrb[6].mxu0 %vm52_vm0, %v19_v26  ;;  %544 = vmatmul.mubr.msk.f32.gmra.mrb[6].mxu1 %vm52_vm0, %v35_v27  ;;  %p593_p4 = pnand %p592_p3, %p586_p0 }
  0x21   :  { %522 = vmatprep.mubr.msk.f32.mxu0 %vm52_vm0, %v20_v28  ;;  %546 = vmatprep.mubr.msk.f32.mxu1 %vm52_vm0, %v36_v29 }
  0x24   :  { %523 = vmatmul.mubr.msk.f32.gmra.mrb[8].mxu0 %vm52_vm0, %v21_v30  ;;  %547 = vmatmul.mubr.msk.f32.gmra.mrb[8].mxu1 %vm52_vm0, %v37_v31 }
  0x25   :  { %525 = vmatprep.mubr.msk.f32.mxu0 %vm52_vm0, %v22_v32  ;;  %549 = vmatprep.mubr.msk.f32.mxu1 %vm52_vm0, %v38_v33 }
  0x28   :  { %526 = vmatmul.mubr.msk.f32.gmra.mrb[10].mxu0 %vm52_vm0, %v23_v34  ;;  %550 = vmatmul.mubr.msk.f32.gmra.mrb[10].mxu1 %vm52_vm0, %v39_v35 }
  0x29   :  { %528 = vmatprep.mubr.msk.f32.mxu0 %vm52_vm0, %v24_v36  ;;  %552 = vmatprep.mubr.msk.f32.mxu1 %vm52_vm0, %v40_v37 }
  0x2c   :  { %529 = vmatmul.mubr.msk.f32.gmra.mrb[12].mxu0 %vm52_vm0, %v25_v38  ;;  %553 = vmatmul.mubr.msk.f32.gmra.mrb[12].mxu1 %vm52_vm0, %v41_v39 }
  0x2d   :  { %531 = vmatprep.mubr.msk.f32.mxu0 %vm52_vm0, %v26_v40  ;;  %555 = vmatprep.mubr.msk.f32.mxu1 %vm52_vm0, %v42_v41 }
  0x30   :  { %532 = vmatmul.mubr.msk.f32.gmra.mrb[14].mxu0 %vm52_vm0, %v27_v42  ;;  %556 = vmatmul.mubr.msk.f32.gmra.mrb[14].mxu1 %vm52_vm0, %v43_v43 }
  0xe7   :  { %v512_v44 = vpop.f32.mrb[0].mxu0  ;;  %v536_v45 = vpop.f32.mrb[0].mxu1 }
  0xe8   :  { %375 = vst [vmem:[#allocation2 + $0x8] sm:$0xff] %v512_v44  ;;  %391 = vst [vmem:[#allocation2 + $0x88] sm:$0xff] %v536_v45  ;;  %v215_v46 = vpop.f32.mrb[1].mxu0  ;;  %v295_v47 = vpop.f32.mrb[1].mxu1 }
  0xe9   :  { %374 = vst [vmem:[#allocation2] sm:$0xff] %v215_v46  ;;  %390 = vst [vmem:[#allocation2 + $0x80] sm:$0xff] %v295_v47 }
  0xeb   :  { %v515_v48 = vpop.f32.mrb[2].mxu0  ;;  %v539_v49 = vpop.f32.mrb[2].mxu1 }
  0xec   :  { %377 = vst [vmem:[#allocation2 + $0x18] sm:$0xff] %v515_v48  ;;  %393 = vst [vmem:[#allocation2 + $0x98] sm:$0xff] %v539_v49  ;;  %v225_v50 = vpop.f32.mrb[3].mxu0  ;;  %v305_v51 = vpop.f32.mrb[3].mxu1 }
  0xed   :  { %376 = vst [vmem:[#allocation2 + $0x10] sm:$0xff] %v225_v50  ;;  %392 = vst [vmem:[#allocation2 + $0x90] sm:$0xff] %v305_v51 }
  0xef   :  { %v518_v52 = vpop.f32.mrb[4].mxu0  ;;  %v542_v53 = vpop.f32.mrb[4].mxu1 }
  0xf0   :  { %379 = vst [vmem:[#allocation2 + $0x28] sm:$0xff] %v518_v52  ;;  %395 = vst [vmem:[#allocation2 + $0xa8] sm:$0xff] %v542_v53  ;;  %v235_v54 = vpop.f32.mrb[5].mxu0  ;;  %v315_v55 = vpop.f32.mrb[5].mxu1 }
  0xf1   :  { %378 = vst [vmem:[#allocation2 + $0x20] sm:$0xff] %v235_v54  ;;  %394 = vst [vmem:[#allocation2 + $0xa0] sm:$0xff] %v315_v55 }
  0xf3   :  { %v521_v56 = vpop.f32.mrb[6].mxu0  ;;  %v545_v57 = vpop.f32.mrb[6].mxu1 }
  0xf4   :  { %381 = vst [vmem:[#allocation2 + $0x38] sm:$0xff] %v521_v56  ;;  %397 = vst [vmem:[#allocation2 + $0xb8] sm:$0xff] %v545_v57  ;;  %v245_v58 = vpop.f32.mrb[7].mxu0  ;;  %v325_v59 = vpop.f32.mrb[7].mxu1 }
  0xf5   :  { %380 = vst [vmem:[#allocation2 + $0x30] sm:$0xff] %v245_v58  ;;  %396 = vst [vmem:[#allocation2 + $0xb0] sm:$0xff] %v325_v59 }
  0xf7   :  { %v524_v60 = vpop.f32.mrb[8].mxu0  ;;  %v548_v61 = vpop.f32.mrb[8].mxu1 }
  0xf8   :  { %383 = vst [vmem:[#allocation2 + $0x48] sm:$0xff] %v524_v60  ;;  %399 = vst [vmem:[#allocation2 + $0xc8] sm:$0xff] %v548_v61  ;;  %v255_v62 = vpop.f32.mrb[9].mxu0  ;;  %v335_v63 = vpop.f32.mrb[9].mxu1 }
  0xf9   :  { %382 = vst [vmem:[#allocation2 + $0x40] sm:$0xff] %v255_v62  ;;  %398 = vst [vmem:[#allocation2 + $0xc0] sm:$0xff] %v335_v63 }
  0xfb   :  { %v527_v0 = vpop.f32.mrb[10].mxu0  ;;  %v551_v1 = vpop.f32.mrb[10].mxu1 }
  0xfc   :  { %385 = vst [vmem:[#allocation2 + $0x58] sm:$0xff] %v527_v0  ;;  %401 = vst [vmem:[#allocation2 + $0xd8] sm:$0xff] %v551_v1  ;;  %v265_v2 = vpop.f32.mrb[11].mxu0  ;;  %v345_v3 = vpop.f32.mrb[11].mxu1 }
  0xfd   :  { %384 = vst [vmem:[#allocation2 + $0x50] sm:$0xff] %v265_v2  ;;  %400 = vst [vmem:[#allocation2 + $0xd0] sm:$0xff] %v345_v3 }
  0xff   :  { %v530_v4 = vpop.f32.mrb[12].mxu0  ;;  %v554_v5 = vpop.f32.mrb[12].mxu1 }
 0x100   :  { %387 = vst [vmem:[#allocation2 + $0x68] sm:$0xff] %v530_v4  ;;  %403 = vst [vmem:[#allocation2 + $0xe8] sm:$0xff] %v554_v5  ;;  %v275_v6 = vpop.f32.mrb[13].mxu0  ;;  %v355_v7 = vpop.f32.mrb[13].mxu1 }
 0x101   :  { %386 = vst [vmem:[#allocation2 + $0x60] sm:$0xff] %v275_v6  ;;  %402 = vst [vmem:[#allocation2 + $0xe0] sm:$0xff] %v355_v7 }
 0x103   :  { %v533_v8 = vpop.f32.mrb[14].mxu0  ;;  %v557_v9 = vpop.f32.mrb[14].mxu1 }
 0x104   :  { %389 = vst [vmem:[#allocation2 + $0x78] sm:$0xff] %v533_v8  ;;  %405 = vst [vmem:[#allocation2 + $0xf8] sm:$0xff] %v557_v9  ;;  %v285_v10 = vpop.f32.mrb[15].mxu0  ;;  %v365_v11 = vpop.f32.mrb[15].mxu1 }
 0x105   :  { %388 = vst [vmem:[#allocation2 + $0x70] sm:$0xff] %v285_v10  ;;  %404 = vst [vmem:[#allocation2 + $0xf0] sm:$0xff] %v365_v11 }
 0x106   :  { %596 = shalt.err (!%p593_p4)
}
 0x107   :  { %s597_s6 = scalar_lea.hbm %s793_s2, 4096 }
 0x108   :  { %p598_p5 = scmp.ne.s32.totalorder %s793_s2, %s597_s6  ;;  %p601_p6 = scmp.lt.u32.totalorder %s597_s6, %s793_s2 }
 0x10a   :  { %p603_p7 = pnand %p601_p6, %p598_p5 }
 0x10c   :  { %606 = shalt.err (!%p603_p7)
}
 0x10d   :  { %s610_s11 = smov 128   ;;  %s611_s12 = smov 8  }
 0x10e   :  { %417 = dma.vmem_to_hbm [thread:$0]  %s412_s1, 4096, %s793_s2, [#allocation3], %s610_s11, %s610_s11, %s611_s12  }
 0x10f   :  { %607 = dma.done.wait [#allocation3], 4096  }
 0x110   :  { %608 = vsyncadd [#allocation3], 4294963200 }
 0x111   :  { %421 = vsyncpa [#allocation3], 1 }

</bundles_post_ra>
